<compile_context>
chip_gen: v5e
topology: v5e:2x2
jax: 0.10.0
libtpu: 0.0.40
codegen_flags: <defaults>
</compile_context>

<pallas_src>
import jax
import jax.numpy as jnp
from jax.experimental import pallas as pl
from jax.experimental.pallas import tpu as pltpu


def _round_up(a, b):
    return ((a + b - 1) // b) * b


def swiglu_kernel(x_ref, w_ref, b_ref, beta_ref, o_ref):
    # x_ref:    (TM, D)   f32 row tile
    # w_ref:    (D, 2D)   bf16 fused [W_gate | W_lin]  (in, out) layout
    # b_ref:    (1, 2D)   f32 fused  [b_gate | b_lin]
    # beta_ref: (1,)      f32 scalar in SMEM
    # o_ref:    (TM, D)
    D = o_ref.shape[1]

    x = x_ref[...].astype(jnp.bfloat16)          # VPU cast, hidden under MXU
    # Single fused MXU pass, f32 accumulation, bias broadcast over rows.
    y = jnp.dot(x, w_ref[...], preferred_element_type=jnp.float32) + b_ref[...]

    g = y[:, :D]        # gate projection   (lane-aligned split: D % 128 == 0)
    lin = y[:, D:]      # linear projection

    beta = beta_ref[0]
    # swish_beta(g) = g * sigmoid(beta * g) = g / (1 + exp(-beta * g))
    e = jnp.exp(-beta * g)                               # EUP transcendental
    swish = g * pl.reciprocal(1.0 + e, approx=True)      # EUP rcp + VPU mul
    o_ref[...] = (swish * lin).astype(o_ref.dtype)


def swiglu(x, w_gate, b_gate, w_lin, b_lin, beta, *, tm=256):
    """SwiGLU forward.  x: (B, T, D).  Weights are (in, out) = W^T of nn.Linear."""
    B, T, D = x.shape
    assert D % 128 == 0, "d_model must be a multiple of 128 (lane width)"
    M = B * T

    # Row tile: large enough to fill the MXU, shrunk for tiny inputs, mult of 8.
    tm = max(8, min(_round_up(tm, 8), _round_up(M, 8)))
    M_pad = _round_up(M, tm)

    x2d = x.reshape(M, D)
    if M_pad != M:
        x2d = jnp.pad(x2d, ((0, M_pad - M), (0, 0)))

    # Fuse the two projections: one (D, 2D) bf16 weight, one (1, 2D) f32 bias.
    w_fused = jnp.concatenate([w_gate, w_lin], axis=1).astype(jnp.bfloat16)
    b_fused = jnp.concatenate([b_gate, b_lin]).reshape(1, 2 * D).astype(jnp.float32)
    beta = beta.reshape(1).astype(jnp.float32)

    grid = (M_pad // tm,)

    # VMEM budget: x/out tiles double-buffered, fused weight/bias single-buffered.
    est = (2 * tm * D * x2d.dtype.itemsize        # x tiles
           + 2 * tm * D * x.dtype.itemsize        # out tiles
           + (2 * D) * D * 2                      # bf16 fused weight (1 buffer)
           + (2 * D) * 4)                         # f32 fused bias
    vmem_limit = min(max(2 * est, 32 * 1024 * 1024), 64 * 1024 * 1024)

    cost = pl.CostEstimate(
        flops=2 * M_pad * D * (2 * D),
        transcendentals=M_pad * D,
        bytes_accessed=(x2d.size * x2d.dtype.itemsize      # x in
                        + M_pad * D * x.dtype.itemsize     # out
                        + w_fused.size * 2                 # bf16 weights
                        + b_fused.size * 4),               # f32 biases
    )

    out2d = pl.pallas_call(
        swiglu_kernel,
        out_shape=jax.ShapeDtypeStruct((M_pad, D), x.dtype),
        grid_spec=pltpu.PrefetchScalarGridSpec(
            num_scalar_prefetch=0,
            grid=grid,
            in_specs=[
                pl.BlockSpec((tm, D), lambda i: (i, 0)),            # x rows
                pl.BlockSpec((D, 2 * D), lambda i: (0, 0),
                             pipeline_mode=pl.Buffered(1)),         # fused W (resident)
                pl.BlockSpec((1, 2 * D), lambda i: (0, 0),
                             pipeline_mode=pl.Buffered(1)),         # fused b (resident)
                pl.BlockSpec(memory_space=pltpu.MemorySpace.SMEM),  # beta scalar
            ],
            out_specs=pl.BlockSpec((tm, D), lambda i: (i, 0)),
        ),
        compiler_params=pltpu.CompilerParams(
            dimension_semantics=("parallel",),
            vmem_limit_bytes=vmem_limit,
        ),
        cost_estimate=cost,
    )(x2d, w_fused, b_fused, beta)

    if M_pad != M:
        out2d = out2d[:M]
    return out2d.reshape(B, T, D)


def swiglu_reference(x, w_gate, b_gate, w_lin, b_lin, beta):
    # Reference applying the same bf16 quantization to the MXU operands that
    # the kernel uses (f32 accumulation); otherwise identical to the PyTorch math.
    xb = x.astype(jnp.bfloat16).astype(jnp.float32)
    wg = w_gate.astype(jnp.bfloat16).astype(jnp.float32)
    wl = w_lin.astype(jnp.bfloat16).astype(jnp.float32)
    g = xb @ wg + b_gate
    lin = xb @ wl + b_lin
    return (g * jax.nn.sigmoid(beta[0] * g)) * lin


if __name__ == "__main__":
    # Small shapes consistent with the module config
    # (batch, context_window, d_model) with a scaled-down batch.
    B, T, D = 2, 64, 128

    key = jax.random.PRNGKey(0)
    kx, kwg, kbg, kwl, kbl = jax.random.split(key, 5)

    x = jax.random.normal(kx, (B, T, D), dtype=jnp.float32)

    # Deterministic parameter init (uniform like nn.Linear's default scale).
    bound = 1.0 / (D ** 0.5)
    w_gate = jax.random.uniform(kwg, (D, D), jnp.float32, -bound, bound)
    b_gate = jax.random.uniform(kbg, (D,), jnp.float32, -bound, bound)
    w_lin = jax.random.uniform(kwl, (D, D), jnp.float32, -bound, bound)
    b_lin = jax.random.uniform(kbl, (D,), jnp.float32, -bound, bound)
    beta = jnp.ones((1,), dtype=jnp.float32)   # nn.Parameter(torch.ones(1))

    out = swiglu(x, w_gate, b_gate, w_lin, b_lin, beta)
    out = jax.block_until_ready(out)

    ref = swiglu_reference(x, w_gate, b_gate, w_lin, b_lin, beta)
    assert out.shape == (B, T, D)
    assert jnp.allclose(out, ref, atol=2e-2, rtol=2e-2), "mismatch vs reference"

    print("KERNEL_OK")
</pallas_src>

<mosaic_0001>
module attributes {stable_mosaic.version = 11 : i64} {
  func.func @swiglu_kernel(%arg0: i32, %arg1: memref<128x128xf32, #tpu.memory_space<vmem>>, %arg2: memref<128x256xbf16, #tpu.memory_space<vmem>>, %arg3: memref<1x256xf32, #tpu.memory_space<vmem>>, %arg4: memref<1xf32, #tpu.memory_space<smem>>, %arg5: memref<128x128xf32, #tpu.memory_space<vmem>>) attributes {dimension_semantics = [#tpu.dimension_semantics<parallel>], iteration_bounds = array<i64: 1>, scalar_prefetch = 0 : i64, scratch_operands = 0 : i64, tpu.core_type = #tpu.core_type<tc>, window_params = [{transform_indices = @transform_0, window_bounds = array<i64: 128, 128>}, {pipeline_mode = #tpu.pipeline_mode<synchronous>, transform_indices = @transform_1, window_bounds = array<i64: 128, 256>}, {pipeline_mode = #tpu.pipeline_mode<synchronous>, transform_indices = @transform_2, window_bounds = array<i64: 1, 256>}, {transform_indices = @transform_3, window_bounds = array<i64: 1>}, {transform_indices = @transform_4, window_bounds = array<i64: 128, 128>}]} {
    %c0 = arith.constant 0 : index
    %c0_0 = arith.constant 0 : index
    %0 = vector.load %arg1[%c0, %c0_0] : memref<128x128xf32, #tpu.memory_space<vmem>>, vector<128x128xf32>
    %1 = arith.truncf %0 : vector<128x128xf32> to vector<128x128xbf16>
    %c0_1 = arith.constant 0 : index
    %c0_2 = arith.constant 0 : index
    %2 = vector.load %arg2[%c0_1, %c0_2] : memref<128x256xbf16, #tpu.memory_space<vmem>>, vector<128x256xbf16>
    %cst = arith.constant dense<0.000000e+00> : vector<128x256xf32>
    %3 = tpu.matmul %1, %2, %cst {dimension_numbers = #tpu.dot_dimension_numbers<[1], [0], [0], [1], [0, 0, 1, 1], [], []>} : vector<128x128xbf16>, vector<128x256xbf16>, vector<128x256xf32> -> vector<128x256xf32>
    %c0_3 = arith.constant 0 : index
    %c0_4 = arith.constant 0 : index
    %4 = vector.load %arg3[%c0_3, %c0_4] : memref<1x256xf32, #tpu.memory_space<vmem>>, vector<1x256xf32>
    %5 = vector.broadcast %4 : vector<1x256xf32> to vector<128x256xf32>
    %6 = arith.addf %3, %5 : vector<128x256xf32>
    %7 = vector.extract_strided_slice %6 {offsets = [0, 0], sizes = [128, 128], strides = [1, 1]} : vector<128x256xf32> to vector<128x128xf32>
    %8 = vector.extract_strided_slice %6 {offsets = [0, 128], sizes = [128, 128], strides = [1, 1]} : vector<128x256xf32> to vector<128x128xf32>
    %c0_5 = arith.constant 0 : index
    %9 = memref.load %arg4[%c0_5] : memref<1xf32, #tpu.memory_space<smem>>
    %cst_6 = arith.constant 0.000000e+00 : f32
    %10 = arith.subf %cst_6, %9 : f32
    %11 = vector.broadcast %10 : f32 to vector<128x128xf32>
    %12 = arith.mulf %11, %7 : vector<128x128xf32>
    %13 = math.exp %12 : vector<128x128xf32>
    %cst_7 = arith.constant 1.000000e+00 : f32
    %14 = vector.broadcast %cst_7 : f32 to vector<128x128xf32>
    %15 = arith.addf %14, %13 : vector<128x128xf32>
    %16 = tpu.reciprocal %15 {approx = true} : vector<128x128xf32> -> vector<128x128xf32>
    %17 = arith.mulf %7, %16 : vector<128x128xf32>
    %18 = arith.mulf %17, %8 : vector<128x128xf32>
    %c0_8 = arith.constant 0 : index
    %c0_9 = arith.constant 0 : index
    %19 = vector.load %arg5[%c0_8, %c0_9] : memref<128x128xf32, #tpu.memory_space<vmem>>, vector<128x128xf32>
    tpu.vector_store %arg5[%c0_8, %c0_9], %18 {strides = array<i32>} : memref<128x128xf32, #tpu.memory_space<vmem>>, vector<128x128xf32>,
    return
  }
  func.func @transform_0(%arg0: i32) -> (i32, i32) {
    %c0_i32 = arith.constant 0 : i32
    %c0_i32_0 = arith.constant 0 : i32
    return %arg0, %c0_i32 : i32, i32
  }
  func.func @transform_1(%arg0: i32) -> (i32, i32) {
    %c0_i32 = arith.constant 0 : i32
    %c0_i32_0 = arith.constant 0 : i32
    %c0_i32_1 = arith.constant 0 : i32
    return %c0_i32, %c0_i32_0 : i32, i32
  }
  func.func @transform_2(%arg0: i32) -> (i32, i32) {
    %c0_i32 = arith.constant 0 : i32
    %c0_i32_0 = arith.constant 0 : i32
    %c0_i32_1 = arith.constant 0 : i32
    return %c0_i32, %c0_i32_0 : i32, i32
  }
  func.func @transform_3(%arg0: i32) -> i32 {
    %c0_i32 = arith.constant 0 : i32
    %c0_i32_0 = arith.constant 0 : i32
    return %c0_i32 : i32
  }
  func.func @transform_4(%arg0: i32) -> (i32, i32) {
    %c0_i32 = arith.constant 0 : i32
    %c0_i32_0 = arith.constant 0 : i32
    return %arg0, %c0_i32 : i32, i32
  }
}

</mosaic_0001>

<bundles_post_ra>
// kernel: tpu_custom_call.1
= control target key start
LH: loop header
LB: loop body
LE: loop exit
PB: predicated region body
PF: predicated region fallthrough
CT: control target
= control target key end

     0   :  { %10 = vsyncpa [#allocation4], 0  ;;  %s817_s0 = inlined_call_operand.hbm [shape: f32[128,128], index: 0, kind: input, shape index: {}]   ;;  %s818_s1 = inlined_call_operand.hbm [shape: bf16[128,256], index: 1, kind: input, shape index: {}]   ;;  %s819_s2 = inlined_call_operand.vmem [shape: f32[1,256], index: 2, kind: input, shape index: {}]   ;;  %s820_s3 = inlined_call_operand.<no memory space> [shape: f32[1], index: 3, kind: input, shape index: {}]   ;;  %s821_s4 = inlined_call_operand.hbm [shape: f32[128,128], index: 4, kind: output, shape index: {}]  }
   0x1   :  { %11 = vsyncpa [#allocation7], 0 }
   0x2   :  { %12 = vsyncpa [#allocation5], 0  ;;  %s17_s17 = sshll.u32 %s817_s0, 4  ;;  %s669_s18 = smov [#allocation3]   ;;  %s18_s17 = int_to_ptr.hbm [resolvable:$true] %s17_s17 }
   0x3   :  { %s19_s19 = sshll.u32 %s669_s18, 4  ;;  %s30_s22 = sshll.u32 %s818_s1, 4  ;;  %s20_s19 = int_to_ptr.vmem [resolvable:$true] %s19_s19  ;;  %s31_s22 = int_to_ptr.hbm [resolvable:$true] %s30_s22 }
   0x4   :  { %s670_s23 = smov 128   ;;  %s671_s24 = smov 8  }
   0x5   :  { %25 = dma.hbm_to_vmem [thread:$0]  %s18_s17, 2048, %s20_s19, [#allocation4], %s670_s23, %s670_s23, %s671_s24  }
   0x6   :  { %s672_s25 = smov [#allocation6]  }
   0x7   :  { %s32_s26 = sshll.u32 %s672_s25, 4  ;;  %s33_s26 = int_to_ptr.vmem [resolvable:$true] %s32_s26 }
   0x8   :  { %38 = dma.hbm_to_vmem [thread:$0]  %s31_s22, 2048, %s33_s26, [#allocation7], %s670_s23, %s670_s23, %s671_s24  }
   0x9   :  { %663 = dma.done.wait [#allocation4], 2048  }
   0xa   :  { %664 = vsyncadd [#allocation4], 4294965248 }
   0xb   :  { %665 = dma.done.wait [#allocation7], 2048  }
   0xc   :  { %666 = vsyncadd [#allocation7], 4294965248  ;;  %v484_v0 = vld [vmem:[#allocation6 + $0x70] sm:$0xf]  ;;  %v505_v1 = vld [vmem:[#allocation6 + $0x74] sm:$0xf0] }
   0xd   :  { %v476_v2 = vld [vmem:[#allocation6 + $0x60] sm:$0xf]  ;;  %v485_v3 = vor.u32 %v505_v1, %v484_v0  ;;  %v503_v4 = vld [vmem:[#allocation6 + $0x64] sm:$0xf0]  ;;  %v504_v5 = vld [vmem:[#allocation6 + $0x74] sm:$0xf] }
   0xe   :  { %v477_v6 = vor.u32 %v503_v4, %v476_v2  ;;  %v468_v7 = vld [vmem:[#allocation6 + $0x50] sm:$0xf]  ;;  %v486_v8 = vld [vmem:[#allocation6 + $0x78] sm:$0xf0]  ;;  %v501_v9 = vld [vmem:[#allocation6 + $0x54] sm:$0xf0] }
   0xf   :  { %177 = vmatpush.bf16.msra.mxu0 %v485_v3  ;;  %506 = vmatpush.bf16.msra.mxu2 %v485_v3  ;;  %v489_v10 = vor.u32 %v504_v5, %v486_v8  ;;  %v502_v11 = vld [vmem:[#allocation6 + $0x64] sm:$0xf]  ;;  %v478_v12 = vld [vmem:[#allocation6 + $0x68] sm:$0xf0]  ;;  %v469_v14 = vor.u32 %v501_v9, %v468_v7  ;;  %v500_v15 = vld [vmem:[#allocation6 + $0x54] sm:$0xf] }
  0x10   :  { %v481_v13 = vor.u32 %v502_v11, %v478_v12  ;;  %v470_v16 = vld [vmem:[#allocation6 + $0x58] sm:$0xf0]  ;;  %v460_v17 = vld [vmem:[#allocation6 + $0x40] sm:$0xf]  ;;  %v499_v18 = vld [vmem:[#allocation6 + $0x44] sm:$0xf0] }
  0x11   :  { %514 = vmatpush.bf16.msra.mxu3 %v489_v10  ;;  %226 = vmatpush.bf16.msra.mxu1 %v489_v10  ;;  %v473_v19 = vor.u32 %v500_v15, %v470_v16  ;;  %v461_v20 = vor.u32 %v499_v18, %v460_v17  ;;  %v498_v21 = vld [vmem:[#allocation6 + $0x44] sm:$0xf]  ;;  %v462_v22 = vld [vmem:[#allocation6 + $0x48] sm:$0xf0]  ;;  %v452_v23 = vld [vmem:[#allocation6 + $0x30] sm:$0xf] }
  0x12   :  { %v497_v24 = vld [vmem:[#allocation6 + $0x34] sm:$0xf0]  ;;  %v465_v25 = vor.u32 %v498_v21, %v462_v22  ;;  %v496_v27 = vld [vmem:[#allocation6 + $0x34] sm:$0xf]  ;;  %v454_v28 = vld [vmem:[#allocation6 + $0x38] sm:$0xf0] }
  0x13   :  { %178 = vmatpush.bf16.msra.mxu0 %v477_v6  ;;  %507 = vmatpush.bf16.msra.mxu2 %v477_v6  ;;  %v453_v26 = vor.u32 %v497_v24, %v452_v23  ;;  %v444_v29 = vld [vmem:[#allocation6 + $0x20] sm:$0xf]  ;;  %v495_v30 = vld [vmem:[#allocation6 + $0x24] sm:$0xf0]  ;;  %v457_v31 = vor.u32 %v496_v27, %v454_v28  ;;  %v494_v33 = vld [vmem:[#allocation6 + $0x24] sm:$0xf] }
  0x14   :  { %v445_v32 = vor.u32 %v495_v30, %v444_v29  ;;  %v446_v34 = vld [vmem:[#allocation6 + $0x28] sm:$0xf0]  ;;  %v436_v35 = vld [vmem:[#allocation6 + $0x10] sm:$0xf]  ;;  %v493_v36 = vld [vmem:[#allocation6 + $0x14] sm:$0xf0] }
  0x15   :  { %515 = vmatpush.bf16.msra.mxu3 %v481_v13  ;;  %227 = vmatpush.bf16.msra.mxu1 %v481_v13  ;;  %v449_v37 = vor.u32 %v494_v33, %v446_v34  ;;  %v437_v38 = vor.u32 %v493_v36, %v436_v35  ;;  %v492_v39 = vld [vmem:[#allocation6 + $0x14] sm:$0xf]  ;;  %v438_v40 = vld [vmem:[#allocation6 + $0x18] sm:$0xf0]  ;;  %v428_v41 = vld [vmem:[#allocation6] sm:$0xf] }
  0x16   :  { %v491_v42 = vld [vmem:[#allocation6 + $0x4] sm:$0xf0]  ;;  %v51_v43 = vld [vmem:[#allocation3] sm:$0xff]  ;;  %v441_v44 = vor.u32 %v492_v39, %v438_v40  ;;  %v430_v50 = vld [vmem:[#allocation6 + $0x8] sm:$0xf0]  ;;  %s276_s29 = ssub.f32 0.0, %s820_s3 }
  0x17   :  { %179 = vmatpush.bf16.msra.mxu0 %v469_v14  ;;  %508 = vmatpush.bf16.msra.mxu2 %v469_v14  ;;  %v429_v45 = vor.u32 %v491_v42, %v428_v41  ;;  %v52_v46 = vld [vmem:[#allocation3 + $0x8] sm:$0xff]  ;;  %v59_v47 = vld [vmem:[#allocation3 + $0x40] sm:$0xff]  ;;  %v53_v54 = vld [vmem:[#allocation3 + $0x10] sm:$0xff]  ;;  %s412_s6 = sshll.u32 %s821_s4, 4  ;;  %s413_s6 = int_to_ptr.hbm [resolvable:$true] %s412_s6 }
  0x18   :  { %v60_v48 = vld [vmem:[#allocation3 + $0x48] sm:$0xff]  ;;  %v490_v49 = vld [vmem:[#allocation6 + $0x4] sm:$0xf]  ;;  %v67_v51 = vpack.c.bf16 %v52_v46, %v51_v43  ;;  %v54_v55 = vld [vmem:[#allocation3 + $0x18] sm:$0xff]  ;;  %v719_v11 = vstv %s276_s29 }
  0x19   :  { %516 = vmatpush.bf16.msra.mxu3 %v473_v19  ;;  %228 = vmatpush.bf16.msra.mxu1 %v473_v19  ;;  %v71_v52 = vpack.c.bf16 %v60_v48, %v59_v47  ;;  %v433_v53 = vor.u32 %v490_v49, %v430_v50  ;;  %v61_v56 = vld [vmem:[#allocation3 + $0x50] sm:$0xff]  ;;  %v62_v57 = vld [vmem:[#allocation3 + $0x58] sm:$0xff]  ;;  %v68_v58 = vpack.c.bf16 %v54_v55, %v53_v54  ;;  %v55_v60 = vld [vmem:[#allocation3 + $0x20] sm:$0xff] }
  0x1a   :  { %v72_v59 = vpack.c.bf16 %v62_v57, %v61_v56  ;;  %v56_v61 = vld [vmem:[#allocation3 + $0x28] sm:$0xff]  ;;  %v63_v62 = vld [vmem:[#allocation3 + $0x60] sm:$0xff]  ;;  %v57_v2 = vld [vmem:[#allocation3 + $0x30] sm:$0xff] }
  0x1b   :  { %180 = vmatpush.bf16.msra.mxu0 %v461_v20  ;;  %509 = vmatpush.bf16.msra.mxu2 %v461_v20  ;;  %v64_v63 = vld [vmem:[#allocation3 + $0x68] sm:$0xff]  ;;  %v69_v0 = vpack.c.bf16 %v56_v61, %v55_v60  ;;  %v58_v3 = vld [vmem:[#allocation3 + $0x38] sm:$0xff]  ;;  %v65_v4 = vld [vmem:[#allocation3 + $0x70] sm:$0xff] }
  0x1c   :  { %v73_v1 = vpack.c.bf16 %v64_v63, %v63_v62  ;;  %v66_v5 = vld [vmem:[#allocation3 + $0x78] sm:$0xff]  ;;  %v70_v6 = vpack.c.bf16 %v58_v3, %v57_v2  ;;  %v91_v8 = vld [vmem:[%s819_s2] sm:$0x3]  ;;  %s673_s2 = smov [#allocation8]  }
  0x1d   :  { %517 = vmatpush.bf16.msra.mxu3 %v465_v25  ;;  %229 = vmatpush.bf16.msra.mxu1 %v465_v25  ;;  %v74_v7 = vpack.c.bf16 %v66_v5, %v65_v4  ;;  %v717_v9 = vperm.slane %v91_v8, 0  ;;  %v735_v33 = vperm.slane %v91_v8, 1  ;;  %s410_s3 = sshll.u32 %s673_s2, 4  ;;  %s411_s3 = int_to_ptr.vmem [resolvable:$true] %s410_s3 }
  0x1f   :  { %181 = vmatpush.bf16.msra.mxu0 %v453_v26  ;;  %510 = vmatpush.bf16.msra.mxu2 %v453_v26 }
  0x21   :  { %518 = vmatpush.bf16.msra.mxu3 %v457_v31  ;;  %230 = vmatpush.bf16.msra.mxu1 %v457_v31 }
  0x23   :  { %182 = vmatpush.bf16.msra.mxu0 %v445_v32  ;;  %511 = vmatpush.bf16.msra.mxu2 %v445_v32 }
  0x25   :  { %519 = vmatpush.bf16.msra.mxu3 %v449_v37  ;;  %231 = vmatpush.bf16.msra.mxu1 %v449_v37 }
  0x27   :  { %183 = vmatpush.bf16.msra.mxu0 %v437_v38  ;;  %512 = vmatpush.bf16.msra.mxu2 %v437_v38 }
  0x29   :  { %520 = vmatpush.bf16.msra.mxu3 %v441_v44  ;;  %232 = vmatpush.bf16.msra.mxu1 %v441_v44 }
  0x2b   :  { %184 = vmatpush.bf16.msra.mxu0 %v429_v45  ;;  %513 = vmatpush.bf16.msra.mxu2 %v429_v45 }
  0x2d   :  { %521 = vmatpush.bf16.msra.mxu3 %v433_v53  ;;  %233 = vmatpush.bf16.msra.mxu1 %v433_v53 }
  0x2e   :  { %185 = vmatmul.bf16.vlgmr.msra.gmra.mxu0 %v67_v51  ;;  %205 = vmatmul.bf16.vlgmr.msra.gmra.mxu2 %v71_v52 }
  0x30   :  { %254 = vmatmul.bf16.vlgmr.msra.gmra.mxu3 %v71_v52  ;;  %234 = vmatmul.bf16.vlgmr.msra.gmra.mxu1 %v67_v51 }
  0x3e   :  { %190 = vmatmul.bf16.gmra.mxu0 %v68_v58  ;;  %210 = vmatmul.bf16.gmra.mxu2 %v72_v59 }
  0x40   :  { %259 = vmatmul.bf16.gmra.mxu3 %v72_v59  ;;  %239 = vmatmul.bf16.gmra.mxu1 %v68_v58 }
  0x4e   :  { %195 = vmatmul.bf16.gmra.mxu0 %v69_v0  ;;  %215 = vmatmul.bf16.gmra.mxu2 %v73_v1 }
  0x50   :  { %264 = vmatmul.bf16.gmra.mxu3 %v73_v1  ;;  %244 = vmatmul.bf16.gmra.mxu1 %v69_v0 }
  0x5e   :  { %200 = vmatmul.bf16.gmra.mxu0 %v70_v6  ;;  %220 = vmatmul.bf16.gmra.mxu2 %v74_v7 }
  0x60   :  { %269 = vmatmul.bf16.gmra.mxu3 %v74_v7  ;;  %249 = vmatmul.bf16.gmra.mxu1 %v70_v6 }
  0xab   :  { %v186_v10 = vpop.f32.mrf.mxu0 }
  0xac   :  { %v187_v12 = vadd.f32 %v186_v10, %v717_v9 }
  0xad   :  { %v235_v16 = vpop.f32.mrf.mxu1 }
  0xae   :  { %v278_v13 = vmul.f32 %v719_v11, %v187_v12  ;;  %v236_v40 = vadd.f32 %v235_v16, %v735_v33 }
  0xb0   :  { %v294_v14 = vmul.f32 1.442695, %v278_v13 }
  0xb1   :  { %v206_v15 = vpop.f32.mrf.mxu2 }
  0xb2   :  { %527 = vpow2.f32 %v294_v14  ;;  %v207_v17 = vadd.f32 %v206_v15, %v717_v9 }
  0xb3   :  { %v188_v18 = vpop.f32.mrf.mxu0  ;;  %v255_v23 = vpop.f32.mrf.mxu3 }
  0xb4   :  { %v286_v19 = vmul.f32 %v719_v11, %v207_v17  ;;  %v189_v20 = vadd.f32 %v188_v18, %v717_v9  ;;  %v256_v53 = vadd.f32 %v255_v23, %v735_v33 }
  0xb5   :  { %v237_v30 = vpop.f32.mrf.mxu1 }
  0xb6   :  { %v310_v21 = vmul.f32 1.442695, %v286_v19  ;;  %v279_v22 = vmul.f32 %v719_v11, %v189_v20  ;;  %v238_v63 = vadd.f32 %v237_v30, %v735_v33 }
  0xb8   :  { %v528_v24 = vpop.eup %527  ;;  %529 = vpow2.f32 %v310_v21  ;;  %v296_v25 = vmul.f32 1.442695, %v279_v22 }
  0xb9   :  { %v326_v26 = vadd.f32 1.0, %v528_v24  ;;  %v208_v27 = vpop.f32.mrf.mxu2 }
  0xba   :  { %531 = vpow2.f32 %v296_v25  ;;  %v728_v28 = vadd.f32 %v208_v27, %v717_v9 }
  0xbb   :  { %533 = vrcp.f32 %v326_v26  ;;  %v191_v29 = vpop.f32.mrf.mxu0  ;;  %v257_v44 = vpop.f32.mrf.mxu3 }
  0xbc   :  { %v287_v31 = vmul.f32 %v719_v11, %v728_v28  ;;  %v733_v32 = vadd.f32 %v191_v29, %v717_v9  ;;  %v258_v16 = vadd.f32 %v257_v44, %v735_v33 }
  0xbd   :  { %v240_v51 = vpop.f32.mrf.mxu1 }
  0xbe   :  { %v530_v34 = vpop.eup %529  ;;  %v312_v35 = vmul.f32 1.442695, %v287_v31  ;;  %v280_v36 = vmul.f32 %v719_v11, %v733_v32  ;;  %v241_v21 = vadd.f32 %v240_v51, %v735_v33 }
  0xbf   :  { %v334_v37 = vadd.f32 1.0, %v530_v34 }
  0xc0   :  { %v532_v38 = vpop.eup %531  ;;  %535 = vpow2.f32 %v312_v35  ;;  %v298_v39 = vmul.f32 1.442695, %v280_v36 }
  0xc1   :  { %v534_v41 = vpop.eup %533  ;;  %537 = vrcp.f32 %v334_v37  ;;  %v327_v42 = vadd.f32 1.0, %v532_v38  ;;  %v211_v43 = vpop.f32.mrf.mxu2 }
  0xc2   :  { %v358_v45 = vmul.f32 %v534_v41, %v187_v12  ;;  %539 = vpow2.f32 %v298_v39  ;;  %v741_v46 = vadd.f32 %v211_v43, %v717_v9 }
  0xc3   :  { %541 = vrcp.f32 %v327_v42  ;;  %v193_v47 = vpop.f32.mrf.mxu0  ;;  %v260_v5 = vpop.f32.mrf.mxu3 }
  0xc4   :  { %v374_v48 = vmul.f32 %v358_v45, %v236_v40  ;;  %v288_v49 = vmul.f32 %v719_v11, %v741_v46  ;;  %v746_v50 = vadd.f32 %v193_v47, %v717_v9 }
  0xc6   :  { %v536_v52 = vpop.eup %535  ;;  %390 = vst [vmem:[#allocation8] sm:$0xff] %v374_v48  ;;  %v314_v54 = vmul.f32 1.442695, %v288_v49  ;;  %v281_v55 = vmul.f32 %v719_v11, %v746_v50 }
  0xc7   :  { %v538_v56 = vpop.eup %537  ;;  %v335_v57 = vadd.f32 1.0, %v536_v52 }
  0xc8   :  { %v540_v58 = vpop.eup %539  ;;  %v366_v59 = vmul.f32 %v538_v56, %v207_v17  ;;  %543 = vpow2.f32 %v314_v54  ;;  %v300_v60 = vmul.f32 1.442695, %v281_v55  ;;  %v242_v17 = vpop.f32.mrf.mxu1 }
  0xc9   :  { %v542_v61 = vpop.eup %541  ;;  %545 = vrcp.f32 %v335_v57  ;;  %v328_v62 = vadd.f32 1.0, %v540_v58  ;;  %v213_v0 = vpop.f32.mrf.mxu2  ;;  %v243_v45 = vadd.f32 %v242_v17, %v735_v33 }
  0xca   :  { %v359_v1 = vmul.f32 %v542_v61, %v189_v20  ;;  %v382_v2 = vmul.f32 %v366_v59, %v256_v53  ;;  %547 = vpow2.f32 %v300_v60  ;;  %v753_v3 = vadd.f32 %v213_v0, %v717_v9 }
  0xcb   :  { %549 = vrcp.f32 %v328_v62  ;;  %v196_v4 = vpop.f32.mrf.mxu0  ;;  %v262_v34 = vpop.f32.mrf.mxu3 }
  0xcc   :  { %398 = vst [vmem:[#allocation8 + $0x40] sm:$0xff] %v382_v2  ;;  %v375_v6 = vmul.f32 %v359_v1, %v238_v63  ;;  %v289_v7 = vmul.f32 %v719_v11, %v753_v3  ;;  %v758_v8 = vadd.f32 %v196_v4, %v717_v9  ;;  %v263_v60 = vadd.f32 %v262_v34, %v735_v33 }
  0xce   :  { %v544_v10 = vpop.eup %543  ;;  %391 = vst [vmem:[#allocation8 + $0x8] sm:$0xff] %v375_v6  ;;  %v316_v12 = vmul.f32 1.442695, %v289_v7  ;;  %v282_v13 = vmul.f32 %v719_v11, %v758_v8 }
  0xcf   :  { %v546_v14 = vpop.eup %545  ;;  %v336_v15 = vadd.f32 1.0, %v544_v10 }
  0xd0   :  { %v548_v18 = vpop.eup %547  ;;  %v367_v19 = vmul.f32 %v546_v14, %v728_v28  ;;  %551 = vpow2.f32 %v316_v12  ;;  %v302_v20 = vmul.f32 1.442695, %v282_v13  ;;  %v245_v48 = vpop.f32.mrf.mxu1 }
  0xd1   :  { %v550_v22 = vpop.eup %549  ;;  %553 = vrcp.f32 %v336_v15  ;;  %v329_v23 = vadd.f32 1.0, %v548_v18  ;;  %v216_v24 = vpop.f32.mrf.mxu2  ;;  %v246_v1 = vadd.f32 %v245_v48, %v735_v33 }
  0xd2   :  { %v360_v25 = vmul.f32 %v550_v22, %v733_v32  ;;  %v383_v26 = vmul.f32 %v367_v19, %v258_v16  ;;  %555 = vpow2.f32 %v302_v20  ;;  %v767_v27 = vadd.f32 %v216_v24, %v717_v9 }
  0xd3   :  { %557 = vrcp.f32 %v329_v23  ;;  %v198_v29 = vpop.f32.mrf.mxu0  ;;  %v261_v32 = vadd.f32 %v260_v5, %v735_v33  ;;  %v265_v61 = vpop.f32.mrf.mxu3 }
  0xd4   :  { %399 = vst [vmem:[#allocation8 + $0x48] sm:$0xff] %v383_v26  ;;  %v376_v30 = vmul.f32 %v360_v25, %v241_v21  ;;  %v290_v28 = vmul.f32 %v719_v11, %v767_v27  ;;  %v772_v31 = vadd.f32 %v198_v29, %v717_v9  ;;  %v266_v17 = vadd.f32 %v265_v61, %v735_v33 }
  0xd6   :  { %v552_v35 = vpop.eup %551  ;;  %392 = vst [vmem:[#allocation8 + $0x10] sm:$0xff] %v376_v30  ;;  %v318_v36 = vmul.f32 1.442695, %v290_v28  ;;  %v283_v37 = vmul.f32 %v719_v11, %v772_v31 }
  0xd7   :  { %v554_v38 = vpop.eup %553  ;;  %v337_v39 = vadd.f32 1.0, %v552_v35 }
  0xd8   :  { %v556_v40 = vpop.eup %555  ;;  %v368_v41 = vmul.f32 %v554_v38, %v741_v46  ;;  %559 = vpow2.f32 %v318_v36  ;;  %v304_v42 = vmul.f32 1.442695, %v283_v37  ;;  %v247_v13 = vpop.f32.mrf.mxu1 }
  0xd9   :  { %v558_v43 = vpop.eup %557  ;;  %561 = vrcp.f32 %v337_v39  ;;  %v330_v44 = vadd.f32 1.0, %v556_v40  ;;  %v218_v47 = vpop.f32.mrf.mxu2  ;;  %v248_v26 = vadd.f32 %v247_v13, %v735_v33 }
  0xda   :  { %v361_v49 = vmul.f32 %v558_v43, %v746_v50  ;;  %v384_v51 = vmul.f32 %v368_v41, %v261_v32  ;;  %563 = vpow2.f32 %v304_v42  ;;  %v781_v52 = vadd.f32 %v218_v47, %v717_v9 }
  0xdb   :  { %565 = vrcp.f32 %v330_v44  ;;  %v201_v53 = vpop.f32.mrf.mxu0  ;;  %v267_v29 = vpop.f32.mrf.mxu3 }
  0xdc   :  { %400 = vst [vmem:[#allocation8 + $0x50] sm:$0xff] %v384_v51  ;;  %v377_v46 = vmul.f32 %v361_v49, %v243_v45  ;;  %v291_v54 = vmul.f32 %v719_v11, %v781_v52  ;;  %v786_v55 = vadd.f32 %v201_v53, %v717_v9 }
  0xde   :  { %v560_v56 = vpop.eup %559  ;;  %393 = vst [vmem:[#allocation8 + $0x18] sm:$0xff] %v377_v46  ;;  %v320_v57 = vmul.f32 1.442695, %v291_v54  ;;  %v284_v50 = vmul.f32 %v719_v11, %v786_v55 }
  0xdf   :  { %v562_v58 = vpop.eup %561  ;;  %v338_v59 = vadd.f32 1.0, %v560_v56 }
  0xe0   :  { %v564_v62 = vpop.eup %563  ;;  %v369_v63 = vmul.f32 %v562_v58, %v753_v3  ;;  %567 = vpow2.f32 %v320_v57  ;;  %v306_v0 = vmul.f32 1.442695, %v284_v50  ;;  %v250_v36 = vpop.f32.mrf.mxu1 }
  0xe1   :  { %v566_v2 = vpop.eup %565  ;;  %569 = vrcp.f32 %v338_v59  ;;  %v331_v4 = vadd.f32 1.0, %v564_v62  ;;  %v221_v5 = vpop.f32.mrf.mxu2  ;;  %v251_v43 = vadd.f32 %v250_v36, %v735_v33 }
  0xe2   :  { %v362_v6 = vmul.f32 %v566_v2, %v758_v8  ;;  %v385_v7 = vmul.f32 %v369_v63, %v263_v60  ;;  %571 = vpow2.f32 %v306_v0  ;;  %v222_v10 = vadd.f32 %v221_v5, %v717_v9 }
  0xe3   :  { %573 = vrcp.f32 %v331_v4  ;;  %v203_v12 = vpop.f32.mrf.mxu0  ;;  %v270_v47 = vpop.f32.mrf.mxu3 }
  0xe4   :  { %401 = vst [vmem:[#allocation8 + $0x58] sm:$0xff] %v385_v7  ;;  %v378_v14 = vmul.f32 %v362_v6, %v246_v1  ;;  %v292_v3 = vmul.f32 %v719_v11, %v222_v10  ;;  %v204_v15 = vadd.f32 %v203_v12, %v717_v9  ;;  %v271_v51 = vadd.f32 %v270_v47, %v735_v33 }
  0xe6   :  { %v568_v16 = vpop.eup %567  ;;  %394 = vst [vmem:[#allocation8 + $0x20] sm:$0xff] %v378_v14  ;;  %v322_v18 = vmul.f32 1.442695, %v292_v3  ;;  %v285_v8 = vmul.f32 %v719_v11, %v204_v15 }
  0xe7   :  { %v570_v19 = vpop.eup %569  ;;  %v339_v20 = vadd.f32 1.0, %v568_v16 }
  0xe8   :  { %v572_v21 = vpop.eup %571  ;;  %v370_v22 = vmul.f32 %v570_v19, %v767_v27  ;;  %575 = vpow2.f32 %v322_v18  ;;  %v308_v23 = vmul.f32 1.442695, %v285_v8  ;;  %v252_v46 = vpop.f32.mrf.mxu1 }
  0xe9   :  { %v574_v24 = vpop.eup %573  ;;  %577 = vrcp.f32 %v339_v20  ;;  %v332_v25 = vadd.f32 1.0, %v572_v21  ;;  %v223_v30 = vpop.f32.mrf.mxu2  ;;  %v253_v58 = vadd.f32 %v252_v46, %v735_v33 }
  0xea   :  { %v363_v28 = vmul.f32 %v574_v24, %v772_v31  ;;  %v386_v34 = vmul.f32 %v370_v22, %v266_v17  ;;  %579 = vpow2.f32 %v308_v23  ;;  %v224_v35 = vadd.f32 %v223_v30, %v717_v9 }
  0xeb   :  { %581 = vrcp.f32 %v332_v25  ;;  %v268_v31 = vadd.f32 %v267_v29, %v735_v33  ;;  %v272_v59 = vpop.f32.mrf.mxu3 }
  0xec   :  { %402 = vst [vmem:[#allocation8 + $0x60] sm:$0xff] %v386_v34  ;;  %v379_v32 = vmul.f32 %v363_v28, %v248_v26  ;;  %v293_v27 = vmul.f32 %v719_v11, %v224_v35  ;;  %v273_v62 = vadd.f32 %v272_v59, %v735_v33 }
  0xee   :  { %v576_v37 = vpop.eup %575  ;;  %395 = vst [vmem:[#allocation8 + $0x28] sm:$0xff] %v379_v32  ;;  %v324_v38 = vmul.f32 1.442695, %v293_v27 }
  0xef   :  { %v578_v39 = vpop.eup %577  ;;  %v340_v40 = vadd.f32 1.0, %v576_v37 }
  0xf0   :  { %v580_v41 = vpop.eup %579  ;;  %v371_v42 = vmul.f32 %v578_v39, %v781_v52  ;;  %583 = vpow2.f32 %v324_v38 }
  0xf1   :  { %v582_v9 = vpop.eup %581  ;;  %585 = vrcp.f32 %v340_v40  ;;  %v333_v44 = vadd.f32 1.0, %v580_v41 }
  0xf2   :  { %v364_v45 = vmul.f32 %v582_v9, %v786_v55  ;;  %v387_v11 = vmul.f32 %v371_v42, %v268_v31 }
  0xf3   :  { %587 = vrcp.f32 %v333_v44 }
  0xf4   :  { %403 = vst [vmem:[#allocation8 + $0x68] sm:$0xff] %v387_v11  ;;  %v380_v48 = vmul.f32 %v364_v45, %v251_v43 }
  0xf6   :  { %v584_v49 = vpop.eup %583  ;;  %396 = vst [vmem:[#allocation8 + $0x30] sm:$0xff] %v380_v48 }
  0xf7   :  { %v586_v52 = vpop.eup %585  ;;  %v341_v53 = vadd.f32 1.0, %v584_v49 }
  0xf8   :  { %v372_v54 = vmul.f32 %v586_v52, %v222_v10 }
  0xf9   :  { %v588_v56 = vpop.eup %587  ;;  %589 = vrcp.f32 %v341_v53 }
  0xfa   :  { %v365_v57 = vmul.f32 %v588_v56, %v204_v15  ;;  %v388_v50 = vmul.f32 %v372_v54, %v271_v51 }
  0xfc   :  { %404 = vst [vmem:[#allocation8 + $0x70] sm:$0xff] %v388_v50  ;;  %v381_v55 = vmul.f32 %v365_v57, %v253_v58 }
  0xfe   :  { %397 = vst [vmem:[#allocation8 + $0x38] sm:$0xff] %v381_v55 }
  0xff   :  { %v590_v60 = vpop.eup %589 }
 0x100   :  { %v373_v61 = vmul.f32 %v590_v60, %v224_v35 }
 0x102   :  { %v389_v63 = vmul.f32 %v373_v61, %v273_v62 }
 0x104   :  { %405 = vst [vmem:[#allocation8 + $0x78] sm:$0xff] %v389_v63 }
 0x105   :  { %418 = dma.vmem_to_hbm [thread:$0]  %s411_s3, 2048, %s413_s6, [#allocation5], %s670_s23, %s670_s23, %s671_s24  }
 0x106   :  { %667 = dma.done.wait [#allocation5], 2048  }
 0x107   :  { %668 = vsyncadd [#allocation5], 4294965248 }
 0x108   :  { %423 = vsyncpa [#allocation4], 1 }
 0x109   :  { %424 = vsyncpa [#allocation7], 1 }
 0x10a   :  { %425 = vsyncpa [#allocation5], 1 }

</bundles_post_ra>
